<compile_context>
chip_gen: v6e
topology: v6e:2x2x1
jax: 0.10.0
libtpu: 0.0.40
codegen_flags: <defaults>
</compile_context>

<pallas_src>
import functools

import jax
import jax.numpy as jnp
from jax.experimental import pallas as pl
from jax.experimental.pallas import tpu as pltpu

HIDDEN = 256
EMB_DIM = 10
NUM_CLASSES = 3
LANE = 128

try:
    _DEVICE_KIND = jax.devices()[0].device_kind.lower()
except Exception:  # pragma: no cover - backend not initialized
    _DEVICE_KIND = ""
# v5e and older have no bf16 VPU/EUP: keep the gating math in f32 there,
# bf16 on v6e/v7x (roughly doubles throughput of the binding EUP slot).
_GATE_DTYPE = (jnp.float32
               if any(v in _DEVICE_KIND for v in ("v2", "v3", "v4", "v5"))
               else jnp.bfloat16)
_NUM_TC = 2 if "v7" in _DEVICE_KIND else 1          # megacore: 2 TCs on v7x
_VMEM_LIMIT = (32 if "v7" in _DEVICE_KIND else 64) * 1024 * 1024


def _round_up(n, m):
    return ((n + m - 1) // m) * m


def _sigmoid_1eup(x):
    # sigmoid(x) = 0.5 * (1 + tanh(x/2)): one EUP op instead of exp + rcp.
    return 0.5 * (jnp.tanh(0.5 * x) + 1.0)


# ----------------------------------------------------------------------------
# Kernel: one batch tile of the fused (2-layer single-step LSTM + Linear).
# ----------------------------------------------------------------------------
def _lstm_gen_kernel(noise_ref, emb_ref, w1n_ref, w1e_ref, b1_ref,
                     w2_ref, b2_ref, wfc_ref, bfc_ref, out_ref):
    H = HIDDEN

    # ---- LSTM layer 1: x = [noise | emb]; split weights avoid any in-kernel
    # concat / 128-lane zero-padding (two tiny-K matmuls instead).
    g1 = (jnp.dot(noise_ref[...], w1n_ref[...],
                  preferred_element_type=jnp.float32)
          + jnp.dot(emb_ref[...], w1e_ref[...],
                    preferred_element_type=jnp.float32)
          + b1_ref[...]).astype(_GATE_DTYPE)                 # (TB, 3H)
    i1 = _sigmoid_1eup(g1[:, 0 * H:1 * H])
    gg1 = jnp.tanh(g1[:, 1 * H:2 * H])
    o1 = _sigmoid_1eup(g1[:, 2 * H:3 * H])
    h1 = (o1 * jnp.tanh(i1 * gg1)).astype(jnp.bfloat16)      # (TB, H)

    # ---- LSTM layer 2 ----
    g2 = (jnp.dot(h1, w2_ref[...], preferred_element_type=jnp.float32)
          + b2_ref[...]).astype(_GATE_DTYPE)                 # (TB, 3H)
    i2 = _sigmoid_1eup(g2[:, 0 * H:1 * H])
    gg2 = jnp.tanh(g2[:, 1 * H:2 * H])
    o2 = _sigmoid_1eup(g2[:, 2 * H:3 * H])
    h2 = (o2 * jnp.tanh(i2 * gg2)).astype(jnp.bfloat16)      # (TB, H)

    # ---- Final fully-connected layer (lane-dense, bf16 store) ----
    out_ref[...] = (jnp.dot(h2, wfc_ref[...],
                            preferred_element_type=jnp.float32)
                    + bfc_ref[...]).astype(out_ref.dtype)


# ----------------------------------------------------------------------------
# Wrapper
# ----------------------------------------------------------------------------
@functools.partial(jax.jit, static_argnames=("out_dim",))
def lstm_generator_forward(noise, labels, kparams, out_dim):
    """noise: (B, latent_dim) f32, labels: (B,) int32 in [0, NUM_CLASSES)."""
    B, latent_dim = noise.shape
    H = HIDDEN
    OUT_PAD = kparams["w_fc"].shape[1]

    # Tiny glue in JAX: the (B, 10) embedding gather; everything else is in
    # the kernel.  Batch is padded to a multiple of 16 (bf16 sublane tile).
    label_emb = jnp.take(kparams["emb"], labels, axis=0)       # (B, 10)

    TB = min(1024, _round_up(max(1, -(-B // _NUM_TC)), 16))
    B_pad = _round_up(B, TB)
    pad = ((0, B_pad - B), (0, 0))
    noise_p = jnp.pad(noise.astype(jnp.bfloat16), pad)         # (B_pad, latent)
    emb_p = jnp.pad(label_emb.astype(jnp.bfloat16), pad)       # (B_pad, 10)

    grid = (B_pad // TB,)
    tile = lambda i: (i, 0)        # activation tiles walk the batch axis
    const = lambda i: (0, 0)       # weights/biases stay VMEM-resident

    flops = 2 * B_pad * ((latent_dim + EMB_DIM) * 3 * H + H * 3 * H
                         + H * OUT_PAD)
    transcendentals = 8 * B_pad * H          # 4 tanh per hidden unit per layer
    bytes_accessed = (2 * B_pad * (latent_dim + EMB_DIM)               # x in
                      + 2 * ((latent_dim + EMB_DIM) * 3 * H            # w1
                             + H * 3 * H + H * OUT_PAD)                # w2, fc
                      + 4 * (2 * 3 * H + OUT_PAD)                      # biases
                      + 2 * B_pad * OUT_PAD)                           # out

    out = pl.pallas_call(
        _lstm_gen_kernel,
        out_shape=jax.ShapeDtypeStruct((B_pad, OUT_PAD), jnp.bfloat16),
        grid=grid,
        in_specs=[
            pl.BlockSpec((TB, latent_dim), tile),     # noise (bf16)
            pl.BlockSpec((TB, EMB_DIM), tile),        # label_emb (bf16)
            pl.BlockSpec((latent_dim, 3 * H), const),  # w1 noise-half (bf16)
            pl.BlockSpec((EMB_DIM, 3 * H), const),     # w1 emb-half (bf16)
            pl.BlockSpec((1, 3 * H), const),           # b1 (f32)
            pl.BlockSpec((H, 3 * H), const),           # w2 (bf16)
            pl.BlockSpec((1, 3 * H), const),           # b2 (f32)
            pl.BlockSpec((H, OUT_PAD), const),         # w_fc (bf16)
            pl.BlockSpec((1, OUT_PAD), const),         # b_fc (f32)
        ],
        out_specs=pl.BlockSpec((TB, OUT_PAD), tile),
        compiler_params=pltpu.CompilerParams(
            dimension_semantics=("parallel",),
            vmem_limit_bytes=_VMEM_LIMIT,
        ),
        cost_estimate=pl.CostEstimate(flops=flops,
                                      transcendentals=transcendentals,
                                      bytes_accessed=bytes_accessed),
    )(noise_p, emb_p, kparams["w1n"], kparams["w1e"], kparams["b1"],
      kparams["w2"], kparams["b2"], kparams["w_fc"], kparams["b_fc"])

    return out[:B, :out_dim].astype(jnp.float32)


# ----------------------------------------------------------------------------
# Parameters: PyTorch-shaped synthetic params + kernel packing.
# ----------------------------------------------------------------------------
def make_torch_params(key, latent_dim, out_dim):
    """Deterministic synthetic parameters in native nn.LSTM / nn.Linear /
    nn.Embedding shapes (same init ranges as PyTorch defaults)."""
    H = HIDDEN
    d_in = latent_dim + EMB_DIM
    ks = jax.random.split(key, 12)
    bound = 1.0 / jnp.sqrt(H)

    def u(k, shape):
        return jax.random.uniform(k, shape, jnp.float32, -bound, bound)

    return {
        "emb": jax.random.normal(ks[0], (NUM_CLASSES, EMB_DIM), jnp.float32),
        "w_ih_l0": u(ks[1], (4 * H, d_in)),
        "w_hh_l0": u(ks[2], (4 * H, H)),
        "b_ih_l0": u(ks[3], (4 * H,)),
        "b_hh_l0": u(ks[4], (4 * H,)),
        "w_ih_l1": u(ks[5], (4 * H, H)),
        "w_hh_l1": u(ks[6], (4 * H, H)),
        "b_ih_l1": u(ks[7], (4 * H,)),
        "b_hh_l1": u(ks[8], (4 * H,)),
        "fc_w": u(ks[9], (out_dim, H)),
        "fc_b": u(ks[10], (out_dim,)),
    }


def pack_params(tp, latent_dim, out_dim):
    """Pack PyTorch-shaped params for the kernel:
    drop f-gate columns (4H -> 3H, [i|g|o]), transpose to [in, out], split the
    layer-1 input weight into noise/embedding halves (so no in-kernel concat),
    lane-pad the FC output dim, cast weights to bf16."""
    H = HIDDEN
    OUT_PAD = _round_up(out_dim, LANE)
    # PyTorch LSTM gate order is [i|f|g|o]; keep i, g, o.
    keep = jnp.concatenate([jnp.arange(0, H),
                            jnp.arange(2 * H, 3 * H),
                            jnp.arange(3 * H, 4 * H)])

    w1 = tp["w_ih_l0"][keep, :]                                # (3H, d_in)
    w1n = w1[:, :latent_dim].T.astype(jnp.bfloat16)            # (latent, 3H)
    w1e = w1[:, latent_dim:].T.astype(jnp.bfloat16)            # (10, 3H)
    b1 = (tp["b_ih_l0"] + tp["b_hh_l0"])[keep][None, :].astype(jnp.float32)

    w2 = tp["w_ih_l1"][keep, :].T.astype(jnp.bfloat16)         # (H, 3H)
    b2 = (tp["b_ih_l1"] + tp["b_hh_l1"])[keep][None, :].astype(jnp.float32)

    w_fc = jnp.pad(tp["fc_w"].T, ((0, 0), (0, OUT_PAD - out_dim)))
    w_fc = w_fc.astype(jnp.bfloat16)                           # (H, OUT_PAD)
    b_fc = jnp.pad(tp["fc_b"], (0, OUT_PAD - out_dim))[None, :].astype(
        jnp.float32)

    # NOTE: w_hh_l0 / w_hh_l1 are intentionally unused (h0 = 0, seq_len = 1).
    return {"emb": tp["emb"], "w1n": w1n, "w1e": w1e, "b1": b1,
            "w2": w2, "b2": b2, "w_fc": w_fc, "b_fc": b_fc}


# ----------------------------------------------------------------------------
# Pure-JAX reference implementing the *full* PyTorch math (f32, with f-gate
# and W_hh terms) for a correctness check.
# ----------------------------------------------------------------------------
def reference_forward(noise, labels, tp):
    H = HIDDEN
    label_emb = jnp.take(tp["emb"], labels, axis=0)
    x = jnp.concatenate([noise, label_emb], axis=-1).astype(jnp.float32)
    B = x.shape[0]
    h0 = jnp.zeros((B, H), jnp.float32)
    c0 = jnp.zeros((B, H), jnp.float32)

    def lstm_cell(x, h, c, w_ih, w_hh, b_ih, b_hh):
        g = x @ w_ih.T + h @ w_hh.T + b_ih + b_hh
        i = jax.nn.sigmoid(g[:, 0 * H:1 * H])
        f = jax.nn.sigmoid(g[:, 1 * H:2 * H])
        gg = jnp.tanh(g[:, 2 * H:3 * H])
        o = jax.nn.sigmoid(g[:, 3 * H:4 * H])
        c_new = f * c + i * gg
        return o * jnp.tanh(c_new), c_new

    h1, _ = lstm_cell(x, h0, c0, tp["w_ih_l0"], tp["w_hh_l0"],
                      tp["b_ih_l0"], tp["b_hh_l0"])
    h2, _ = lstm_cell(h1, h0, c0, tp["w_ih_l1"], tp["w_hh_l1"],
                      tp["b_ih_l1"], tp["b_hh_l1"])
    return h2 @ tp["fc_w"].T + tp["fc_b"]


if __name__ == "__main__":
    key = jax.random.PRNGKey(0)
    k_noise, k_lbl, k_par = jax.random.split(key, 3)

    batch = 2
    latent_dim = 22            # -> LSTM input_size = latent_dim + 10 = 32
    out_dim = 16               # input_shape[0] of the generator target series

    noise = jax.random.normal(k_noise, (batch, latent_dim), jnp.float32)
    labels = jax.random.randint(k_lbl, (batch,), 0, NUM_CLASSES, jnp.int32)

    torch_params = make_torch_params(k_par, latent_dim, out_dim)
    kparams = pack_params(torch_params, latent_dim, out_dim)

    out = lstm_generator_forward(noise, labels, kparams, out_dim)
    out = jax.block_until_ready(out)

    ref = reference_forward(noise, labels, torch_params)
    assert out.shape == (batch, out_dim)
    # bf16 weights / matmul inputs (and bf16 gating on v6e/v7x) with f32
    # accumulation -> loose tolerance.
    assert jnp.allclose(out, ref, atol=3e-2, rtol=3e-2), (
        float(jnp.max(jnp.abs(out - ref))))

    print("KERNEL_OK")
</pallas_src>

<mosaic_0001>
module attributes {stable_mosaic.version = 11 : i64} {
  func.func @_lstm_gen_kernel(%arg0: i32, %arg1: memref<16x22xbf16, #tpu.memory_space<vmem>>, %arg2: memref<16x10xbf16, #tpu.memory_space<vmem>>, %arg3: memref<22x768xbf16, #tpu.memory_space<vmem>>, %arg4: memref<10x768xbf16, #tpu.memory_space<vmem>>, %arg5: memref<1x768xf32, #tpu.memory_space<vmem>>, %arg6: memref<256x768xbf16, #tpu.memory_space<vmem>>, %arg7: memref<1x768xf32, #tpu.memory_space<vmem>>, %arg8: memref<256x128xbf16, #tpu.memory_space<vmem>>, %arg9: memref<1x128xf32, #tpu.memory_space<vmem>>, %arg10: memref<16x128xbf16, #tpu.memory_space<vmem>>) attributes {dimension_semantics = [#tpu.dimension_semantics<parallel>], iteration_bounds = array<i64: 1>, scalar_prefetch = 0 : i64, scratch_operands = 0 : i64, tpu.core_type = #tpu.core_type<tc>, window_params = [{transform_indices = @transform_0, window_bounds = array<i64: 16, 22>}, {transform_indices = @transform_1, window_bounds = array<i64: 16, 10>}, {pipeline_mode = #tpu.pipeline_mode<synchronous>, transform_indices = @transform_2, window_bounds = array<i64: 22, 768>}, {pipeline_mode = #tpu.pipeline_mode<synchronous>, transform_indices = @transform_3, window_bounds = array<i64: 10, 768>}, {pipeline_mode = #tpu.pipeline_mode<synchronous>, transform_indices = @transform_4, window_bounds = array<i64: 1, 768>}, {pipeline_mode = #tpu.pipeline_mode<synchronous>, transform_indices = @transform_5, window_bounds = array<i64: 256, 768>}, {pipeline_mode = #tpu.pipeline_mode<synchronous>, transform_indices = @transform_6, window_bounds = array<i64: 1, 768>}, {pipeline_mode = #tpu.pipeline_mode<synchronous>, transform_indices = @transform_7, window_bounds = array<i64: 256, 128>}, {pipeline_mode = #tpu.pipeline_mode<synchronous>, transform_indices = @transform_8, window_bounds = array<i64: 1, 128>}, {transform_indices = @transform_9, window_bounds = array<i64: 16, 128>}]} {
    %c0 = arith.constant 0 : index
    %c0_0 = arith.constant 0 : index
    %0 = vector.load %arg1[%c0, %c0_0] : memref<16x22xbf16, #tpu.memory_space<vmem>>, vector<16x22xbf16>
    %c0_1 = arith.constant 0 : index
    %c0_2 = arith.constant 0 : index
    %1 = vector.load %arg3[%c0_1, %c0_2] : memref<22x768xbf16, #tpu.memory_space<vmem>>, vector<22x768xbf16>
    %cst = arith.constant dense<0.000000e+00> : vector<16x768xf32>
    %2 = tpu.matmul %0, %1, %cst {dimension_numbers = #tpu.dot_dimension_numbers<[1], [0], [0], [1], [0, 0, 1, 1], [], []>} : vector<16x22xbf16>, vector<22x768xbf16>, vector<16x768xf32> -> vector<16x768xf32>
    %c0_3 = arith.constant 0 : index
    %c0_4 = arith.constant 0 : index
    %3 = vector.load %arg2[%c0_3, %c0_4] : memref<16x10xbf16, #tpu.memory_space<vmem>>, vector<16x10xbf16>
    %c0_5 = arith.constant 0 : index
    %c0_6 = arith.constant 0 : index
    %4 = vector.load %arg4[%c0_5, %c0_6] : memref<10x768xbf16, #tpu.memory_space<vmem>>, vector<10x768xbf16>
    %cst_7 = arith.constant dense<0.000000e+00> : vector<16x768xf32>
    %5 = tpu.matmul %3, %4, %cst_7 {dimension_numbers = #tpu.dot_dimension_numbers<[1], [0], [0], [1], [0, 0, 1, 1], [], []>} : vector<16x10xbf16>, vector<10x768xbf16>, vector<16x768xf32> -> vector<16x768xf32>
    %6 = arith.addf %2, %5 : vector<16x768xf32>
    %c0_8 = arith.constant 0 : index
    %c0_9 = arith.constant 0 : index
    %7 = vector.load %arg5[%c0_8, %c0_9] : memref<1x768xf32, #tpu.memory_space<vmem>>, vector<1x768xf32>
    %8 = vector.broadcast %7 : vector<1x768xf32> to vector<16x768xf32>
    %9 = arith.addf %6, %8 : vector<16x768xf32>
    %10 = arith.truncf %9 : vector<16x768xf32> to vector<16x768xbf16>
    %11 = vector.extract_strided_slice %10 {offsets = [0, 0], sizes = [16, 256], strides = [1, 1]} : vector<16x768xbf16> to vector<16x256xbf16>
    %cst_10 = arith.constant 5.000000e-01 : bf16
    %12 = vector.broadcast %cst_10 : bf16 to vector<16x256xbf16>
    %13 = arith.mulf %12, %11 : vector<16x256xbf16>
    %14 = math.tanh %13 : vector<16x256xbf16>
    %cst_11 = arith.constant 1.000000e+00 : bf16
    %15 = vector.broadcast %cst_11 : bf16 to vector<16x256xbf16>
    %16 = arith.addf %14, %15 : vector<16x256xbf16>
    %cst_12 = arith.constant 5.000000e-01 : bf16
    %17 = vector.broadcast %cst_12 : bf16 to vector<16x256xbf16>
    %18 = arith.mulf %17, %16 : vector<16x256xbf16>
    %19 = vector.extract_strided_slice %10 {offsets = [0, 256], sizes = [16, 256], strides = [1, 1]} : vector<16x768xbf16> to vector<16x256xbf16>
    %20 = math.tanh %19 : vector<16x256xbf16>
    %21 = vector.extract_strided_slice %10 {offsets = [0, 512], sizes = [16, 256], strides = [1, 1]} : vector<16x768xbf16> to vector<16x256xbf16>
    %cst_13 = arith.constant 5.000000e-01 : bf16
    %22 = vector.broadcast %cst_13 : bf16 to vector<16x256xbf16>
    %23 = arith.mulf %22, %21 : vector<16x256xbf16>
    %24 = math.tanh %23 : vector<16x256xbf16>
    %cst_14 = arith.constant 1.000000e+00 : bf16
    %25 = vector.broadcast %cst_14 : bf16 to vector<16x256xbf16>
    %26 = arith.addf %24, %25 : vector<16x256xbf16>
    %cst_15 = arith.constant 5.000000e-01 : bf16
    %27 = vector.broadcast %cst_15 : bf16 to vector<16x256xbf16>
    %28 = arith.mulf %27, %26 : vector<16x256xbf16>
    %29 = arith.mulf %18, %20 : vector<16x256xbf16>
    %30 = math.tanh %29 : vector<16x256xbf16>
    %31 = arith.mulf %28, %30 : vector<16x256xbf16>
    %c0_16 = arith.constant 0 : index
    %c0_17 = arith.constant 0 : index
    %32 = vector.load %arg6[%c0_16, %c0_17] : memref<256x768xbf16, #tpu.memory_space<vmem>>, vector<256x768xbf16>
    %cst_18 = arith.constant dense<0.000000e+00> : vector<16x768xf32>
    %33 = tpu.matmul %31, %32, %cst_18 {dimension_numbers = #tpu.dot_dimension_numbers<[1], [0], [0], [1], [0, 0, 1, 1], [], []>} : vector<16x256xbf16>, vector<256x768xbf16>, vector<16x768xf32> -> vector<16x768xf32>
    %c0_19 = arith.constant 0 : index
    %c0_20 = arith.constant 0 : index
    %34 = vector.load %arg7[%c0_19, %c0_20] : memref<1x768xf32, #tpu.memory_space<vmem>>, vector<1x768xf32>
    %35 = vector.broadcast %34 : vector<1x768xf32> to vector<16x768xf32>
    %36 = arith.addf %33, %35 : vector<16x768xf32>
    %37 = arith.truncf %36 : vector<16x768xf32> to vector<16x768xbf16>
    %38 = vector.extract_strided_slice %37 {offsets = [0, 0], sizes = [16, 256], strides = [1, 1]} : vector<16x768xbf16> to vector<16x256xbf16>
    %cst_21 = arith.constant 5.000000e-01 : bf16
    %39 = vector.broadcast %cst_21 : bf16 to vector<16x256xbf16>
    %40 = arith.mulf %39, %38 : vector<16x256xbf16>
    %41 = math.tanh %40 : vector<16x256xbf16>
    %cst_22 = arith.constant 1.000000e+00 : bf16
    %42 = vector.broadcast %cst_22 : bf16 to vector<16x256xbf16>
    %43 = arith.addf %41, %42 : vector<16x256xbf16>
    %cst_23 = arith.constant 5.000000e-01 : bf16
    %44 = vector.broadcast %cst_23 : bf16 to vector<16x256xbf16>
    %45 = arith.mulf %44, %43 : vector<16x256xbf16>
    %46 = vector.extract_strided_slice %37 {offsets = [0, 256], sizes = [16, 256], strides = [1, 1]} : vector<16x768xbf16> to vector<16x256xbf16>
    %47 = math.tanh %46 : vector<16x256xbf16>
    %48 = vector.extract_strided_slice %37 {offsets = [0, 512], sizes = [16, 256], strides = [1, 1]} : vector<16x768xbf16> to vector<16x256xbf16>
    %cst_24 = arith.constant 5.000000e-01 : bf16
    %49 = vector.broadcast %cst_24 : bf16 to vector<16x256xbf16>
    %50 = arith.mulf %49, %48 : vector<16x256xbf16>
    %51 = math.tanh %50 : vector<16x256xbf16>
    %cst_25 = arith.constant 1.000000e+00 : bf16
    %52 = vector.broadcast %cst_25 : bf16 to vector<16x256xbf16>
    %53 = arith.addf %51, %52 : vector<16x256xbf16>
    %cst_26 = arith.constant 5.000000e-01 : bf16
    %54 = vector.broadcast %cst_26 : bf16 to vector<16x256xbf16>
    %55 = arith.mulf %54, %53 : vector<16x256xbf16>
    %56 = arith.mulf %45, %47 : vector<16x256xbf16>
    %57 = math.tanh %56 : vector<16x256xbf16>
    %58 = arith.mulf %55, %57 : vector<16x256xbf16>
    %c0_27 = arith.constant 0 : index
    %c0_28 = arith.constant 0 : index
    %59 = vector.load %arg8[%c0_27, %c0_28] : memref<256x128xbf16, #tpu.memory_space<vmem>>, vector<256x128xbf16>
    %cst_29 = arith.constant dense<0.000000e+00> : vector<16x128xf32>
    %60 = tpu.matmul %58, %59, %cst_29 {dimension_numbers = #tpu.dot_dimension_numbers<[1], [0], [0], [1], [0, 0, 1, 1], [], []>} : vector<16x256xbf16>, vector<256x128xbf16>, vector<16x128xf32> -> vector<16x128xf32>
    %c0_30 = arith.constant 0 : index
    %c0_31 = arith.constant 0 : index
    %61 = vector.load %arg9[%c0_30, %c0_31] : memref<1x128xf32, #tpu.memory_space<vmem>>, vector<1x128xf32>
    %62 = vector.broadcast %61 : vector<1x128xf32> to vector<16x128xf32>
    %63 = arith.addf %60, %62 : vector<16x128xf32>
    %64 = arith.truncf %63 : vector<16x128xf32> to vector<16x128xbf16>
    %c0_32 = arith.constant 0 : index
    %c0_33 = arith.constant 0 : index
    %65 = vector.load %arg10[%c0_32, %c0_33] : memref<16x128xbf16, #tpu.memory_space<vmem>>, vector<16x128xbf16>
    tpu.vector_store %arg10[%c0_32, %c0_33], %64 {strides = array<i32>} : memref<16x128xbf16, #tpu.memory_space<vmem>>, vector<16x128xbf16>,
    return
  }
  func.func @transform_0(%arg0: i32) -> (i32, i32) {
    %c0_i32 = arith.constant 0 : i32
    %c0_i32_0 = arith.constant 0 : i32
    return %arg0, %c0_i32 : i32, i32
  }
  func.func @transform_1(%arg0: i32) -> (i32, i32) {
    %c0_i32 = arith.constant 0 : i32
    %c0_i32_0 = arith.constant 0 : i32
    return %arg0, %c0_i32 : i32, i32
  }
  func.func @transform_2(%arg0: i32) -> (i32, i32) {
    %c0_i32 = arith.constant 0 : i32
    %c0_i32_0 = arith.constant 0 : i32
    %c0_i32_1 = arith.constant 0 : i32
    return %c0_i32, %c0_i32_0 : i32, i32
  }
  func.func @transform_3(%arg0: i32) -> (i32, i32) {
    %c0_i32 = arith.constant 0 : i32
    %c0_i32_0 = arith.constant 0 : i32
    %c0_i32_1 = arith.constant 0 : i32
    return %c0_i32, %c0_i32_0 : i32, i32
  }
  func.func @transform_4(%arg0: i32) -> (i32, i32) {
    %c0_i32 = arith.constant 0 : i32
    %c0_i32_0 = arith.constant 0 : i32
    %c0_i32_1 = arith.constant 0 : i32
    return %c0_i32, %c0_i32_0 : i32, i32
  }
  func.func @transform_5(%arg0: i32) -> (i32, i32) {
    %c0_i32 = arith.constant 0 : i32
    %c0_i32_0 = arith.constant 0 : i32
    %c0_i32_1 = arith.constant 0 : i32
    return %c0_i32, %c0_i32_0 : i32, i32
  }
  func.func @transform_6(%arg0: i32) -> (i32, i32) {
    %c0_i32 = arith.constant 0 : i32
    %c0_i32_0 = arith.constant 0 : i32
    %c0_i32_1 = arith.constant 0 : i32
    return %c0_i32, %c0_i32_0 : i32, i32
  }
  func.func @transform_7(%arg0: i32) -> (i32, i32) {
    %c0_i32 = arith.constant 0 : i32
    %c0_i32_0 = arith.constant 0 : i32
    %c0_i32_1 = arith.constant 0 : i32
    return %c0_i32, %c0_i32_0 : i32, i32
  }
  func.func @transform_8(%arg0: i32) -> (i32, i32) {
    %c0_i32 = arith.constant 0 : i32
    %c0_i32_0 = arith.constant 0 : i32
    %c0_i32_1 = arith.constant 0 : i32
    return %c0_i32, %c0_i32_0 : i32, i32
  }
  func.func @transform_9(%arg0: i32) -> (i32, i32) {
    %c0_i32 = arith.constant 0 : i32
    %c0_i32_0 = arith.constant 0 : i32
    return %arg0, %c0_i32 : i32, i32
  }
}

</mosaic_0001>

<bundles_post_ra>
// kernel: lstm_generator_forward.1
= control target key start
LH: loop header
LB: loop body
LE: loop exit
PB: predicated region body
PF: predicated region fallthrough
CT: control target
= control target key end

     0   :  { %14 = vsyncpa [#allocation3], 0  ;;  %s2172_s0 = inlined_call_operand.vmem [shape: bf16[16,22], index: 0, kind: input, shape index: {}]   ;;  %s2173_s1 = inlined_call_operand.vmem [shape: bf16[16,10], index: 1, kind: input, shape index: {}]   ;;  %s2174_s2 = inlined_call_operand.hbm [shape: bf16[22,768], index: 2, kind: input, shape index: {}]   ;;  %s2175_s3 = inlined_call_operand.vmem [shape: bf16[10,768], index: 3, kind: input, shape index: {}]   ;;  %s2176_s4 = inlined_call_operand.vmem [shape: f32[1,768], index: 4, kind: input, shape index: {}]   ;;  %s2177_s5 = inlined_call_operand.hbm [shape: bf16[256,768], index: 5, kind: input, shape index: {}]   ;;  %s2178_s6 = inlined_call_operand.hbm [shape: f32[1,768], index: 6, kind: input, shape index: {}]   ;;  %s2179_s7 = inlined_call_operand.hbm [shape: bf16[256,128], index: 7, kind: input, shape index: {}]   ;;  %s2180_s8 = inlined_call_operand.vmem [shape: f32[1,128], index: 8, kind: input, shape index: {}]   ;;  %s2181_s9 = inlined_call_operand.vmem [shape: bf16[16,128], index: 9, kind: output, shape index: {}]  }
   0x1   :  { %15 = vsyncpa [#allocation5], 0 }
   0x2   :  { %16 = vsyncpa [#allocation8], 0  ;;  %s2013_s30 = smov [#allocation4]   ;;  %s2014_s11 = smov [#allocation2]  }
   0x3   :  { %s42_s10 = sshll.u32 %s2013_s30, 4  ;;  %s26_s12 = sshll.u32 %s2014_s11, 4  ;;  %s43_s10 = int_to_ptr.vmem [resolvable:$true] %s42_s10  ;;  %s27_s12 = int_to_ptr.vmem [resolvable:$true] %s26_s12 }
   0x4   :  { %s1935_s13 = scalar_lea.vmem %s43_s10, 12288  ;;  %p1940_p1 = scmp.lt.s32.totalorder %s43_s10, %s43_s10 }
   0x5   :  { %p1936_p0 = scmp.ne.s32.totalorder %s43_s10, %s1935_s13  ;;  %p1941_p2 = scmp.lt.s32.totalorder %s1935_s13, %s1935_s13 }
   0x7   :  { %p1942_p3 = por %p1941_p2, %p1940_p1 }
   0x9   :  { %p1943_p4 = pnand %p1942_p3, %p1936_p0 }
   0xb   :  { %1946 = shalt.err (!%p1943_p4)
}
   0xc   :  { %s2015_s14 = smov 384   ;;  %s2016_s15 = smov 24  }
   0xd   :  { %48 = dma.hbm_to_vmem [thread:$0]  %s2177_s5, 12288, %s43_s10, [#allocation5], %s2015_s14, %s2015_s14, %s2016_s15  }
   0xe   :  { %s1955_s18 = scalar_lea.vmem %s27_s12, 1152  ;;  %p1960_p6 = scmp.lt.s32.totalorder %s27_s12, %s27_s12 }
   0xf   :  { %p1956_p5 = scmp.ne.s32.totalorder %s27_s12, %s1955_s18  ;;  %p1961_p7 = scmp.lt.s32.totalorder %s1955_s18, %s1955_s18 }
  0x11   :  { %p1962_p8 = por %p1961_p7, %p1960_p6 }
  0x13   :  { %p1963_p9 = pnand %p1962_p8, %p1956_p5 }
  0x15   :  { %1966 = shalt.err (!%p1963_p9)
}
  0x16   :  { %32 = dma.hbm_to_vmem [thread:$0]  %s2174_s2, 1152, %s27_s12, [#allocation3], %s2015_s14, %s2015_s14, %s2016_s15  }
  0x17   :  { %s2017_s21 = smov [#allocation6]   ;;  %s2018_s23 = smov [#allocation7]  }
  0x18   :  { %s55_s22 = sshll.u32 %s2017_s21, 4  ;;  %s64_s24 = sshll.u32 %s2018_s23, 4  ;;  %s56_s22 = int_to_ptr.vmem [resolvable:$true] %s55_s22  ;;  %s65_s24 = int_to_ptr.vmem [resolvable:$true] %s64_s24 }
  0x19   :  { %s1975_s25 = scalar_lea.vmem %s56_s22, 96  ;;  %p1980_p11 = scmp.lt.s32.totalorder %s56_s22, %s56_s22 }
  0x1a   :  { %p1976_p10 = scmp.ne.s32.totalorder %s56_s22, %s1975_s25  ;;  %p1981_p12 = scmp.lt.s32.totalorder %s1975_s25, %s1975_s25 }
  0x1c   :  { %p1982_p13 = por %p1981_p12, %p1980_p11 }
  0x1e   :  { %p1983_p0 = pnand %p1982_p13, %p1976_p10 }
  0x20   :  { %1986 = shalt.err (!%p1983_p0)
}
  0x21   :  { %58 = dma.hbm_to_vmem [thread:$0]  %s2178_s6, 96, %s56_s22, [#allocation5]  }
  0x22   :  { %s1995_s27 = scalar_lea.vmem %s65_s24, 2048  ;;  %p2000_p2 = scmp.lt.s32.totalorder %s65_s24, %s65_s24 }
  0x23   :  { %p1996_p1 = scmp.ne.s32.totalorder %s65_s24, %s1995_s27  ;;  %p2001_p3 = scmp.lt.s32.totalorder %s1995_s27, %s1995_s27 }
  0x25   :  { %p2002_p4 = por %p2001_p3, %p2000_p2 }
  0x27   :  { %p2003_p5 = pnand %p2002_p4, %p1996_p1 }
  0x29   :  { %2006 = shalt.err (!%p2003_p5)
}
  0x2a   :  { %s2019_s2 = smov 64   ;;  %s2020_s28 = smov 4  }
  0x2b   :  { %70 = dma.hbm_to_vmem [thread:$0]  %s2179_s7, 2048, %s65_s24, [#allocation8], %s2019_s2, %s2019_s2, %s2020_s28  }
  0x2c   :  { %2007 = dma.done.wait [#allocation3], 1152  }
  0x2d   :  { %2008 = vsyncadd [#allocation3], 4294966144 }
  0x2e   :  { %2009 = dma.done.wait [#allocation5], 12384  }
  0x2f   :  { %2010 = vsyncadd [#allocation5], 4294954912 }
  0x30   :  { %2011 = dma.done.wait [#allocation8], 2048  }
  0x31   :  { %2012 = vsyncadd [#allocation8], 4294965248  ;;  %v2021_v0 = vmov 0   ;;  %vm140_vm0 = vcmask 1044480   ;;  %v1712_v3 = vld [vmem:[%s2173_s1] sm:$0xff]   ;;  %vm136_vm1 = vcmask 80896  }
  0x32   :  { %191 = vmatprep.mubr.bf16.mxu1 %v2021_v0  ;;  %277 = vmatprep.mubr.bf16.mxu0 %v2021_v0  ;;  %v1709_v1 = vld [vmem:[%s2175_s3 + $0x4] ss:$24 sps:$4 sm:$0x1f]   ;;  %v1711_v2 = vld [vmem:[%s2175_s3] ss:$24 sps:$4 sm:$0x1f]  }
  0x33   :  { %1531 = vmatprep.subr.msk.bf16.mxu1 %vm140_vm0, %v1709_v1  ;;  %v142_v4 = vsel %vm140_vm0, %v1711_v2, 0  ;;  %v1713_v5 = vld [vmem:[%s2175_s3 + $0xc] ss:$24 sps:$4 sm:$0x1f]   ;;  %vm342_vm2 = vcmask 1042432   ;;  %vm338_vm3 = vcmask 179200  }
  0x34   :  { %v96_v6 = vld [vmem:[#allocation2 + $0x30] sm:$0x77]  ;;  %174 = vmatpush1.bf16.msra.mxu1 %v142_v4  ;;  %v1720_v13 = vld [vmem:[#allocation2 + $0x4] ss:$24 sps:$4 sm:$0xff]   ;;  %v1718_v17 = vld [vmem:[#allocation2] ss:$24 sps:$4 sm:$0xff]  }
  0x35   :  { %v1715_v7 = vld [vmem:[%s2175_s3 + $0x8] ss:$24 sps:$4 sm:$0x1f]   ;;  %1533 = vmatprep.subr.msk.bf16.mxu1 %vm140_vm0, %v1713_v5  ;;  %v1545_v8 = vcombine.high %v96_v6, %v96_v6  ;;  %v1544_v10 = vcombine.low %v96_v6, %v96_v6  ;;  %v1729_v11 = vld [vmem:[%s2175_s3 + $0x14] ss:$24 sps:$4 sm:$0x1f]  }
  0x36   :  { %v148_v9 = vsel %vm140_vm0, %v1715_v7, 0  ;;  %v1731_v12 = vld [vmem:[%s2175_s3 + $0x10] ss:$24 sps:$4 sm:$0x1f]   ;;  %1535 = vmatprep.subr.msk.bf16.mxu0 %vm140_vm0, %v1729_v11  ;;  %v1721_v18 = vld [vmem:[%s2172_s0] sm:$0xff]  }
  0x37   :  { %1532 = vmatmul.mubr.msk.bf16.vlgmr.msra.gmra.mxu1 %vm136_vm1, %v1712_v3  ;;  %v97_v14 = vld [vmem:[#allocation2 + $0x38] sm:$0x77]  ;;  %v154_v15 = vsel %vm140_vm0, %v1731_v12, 0  ;;  %v344_v16 = vsel %vm342_vm2, %v1544_v10, 0  ;;  %v1726_v21 = vld [vmem:[#allocation2 + $0xc] ss:$24 sps:$4 sm:$0xff]  }
  0x38   :  { %217 = vmatpush1.bf16.msra.mxu1 %v148_v9  ;;  %234 = vmatprep.mubr.bf16.mxu1 %v2021_v0  ;;  %v1547_v19 = vcombine.high %v97_v14, %v97_v14  ;;  %v1546_v20 = vcombine.low %v97_v14, %v97_v14  ;;  %v98_v22 = vld [vmem:[#allocation2 + $0x40] sm:$0x77]  ;;  %v1734_v27 = vld [vmem:[#allocation2 + $0x14] ss:$24 sps:$4 sm:$0xff]   ;;  %v1732_v29 = vld [vmem:[#allocation2 + $0x10] ss:$24 sps:$4 sm:$0xff]  }
  0x39   :  { %1550 = vmatprep.subr.msk.bf16.mxu1 %vm342_vm2, %v1545_v8  ;;  %260 = vmatpush1.bf16.msra.mxu0 %v154_v15  ;;  %v1724_v24 = vld [vmem:[#allocation2 + $0x8] ss:$24 sps:$4 sm:$0xff]   ;;  %v1549_v25 = vcombine.high %v98_v22, %v98_v22  ;;  %v1548_v26 = vcombine.low %v98_v22, %v98_v22  ;;  %v1737_v30 = vld [vmem:[#allocation4 + $0x154] ss:$24 sps:$4 sm:$0xff]   ;;  %v1735_v31 = vld [vmem:[#allocation4 + $0x150] ss:$24 sps:$4 sm:$0xff]  }
  0x3a   :  { %v350_v23 = vsel %vm342_vm2, %v1546_v20, 0  ;;  %v1740_v32 = vld [vmem:[#allocation4 + $0x15c] ss:$24 sps:$4 sm:$0xff]   ;;  %1172 = vmatprep.subr.bf16.mxu0 %v1737_v30  ;;  %v1738_v33 = vld [vmem:[#allocation4 + $0x158] ss:$24 sps:$4 sm:$0xff]  }
  0x3b   :  { %v356_v28 = vsel %vm342_vm2, %v1548_v26, 0  ;;  %v1743_v34 = vld [vmem:[#allocation4 + $0x124] ss:$24 sps:$4 sm:$0xff]   ;;  %v1741_v35 = vld [vmem:[#allocation4 + $0x120] ss:$24 sps:$4 sm:$0xff]  }
  0x3c   :  { %1536 = vmatmul.mubr.msk.bf16.vlgmr.msra.gmra.mxu0 %vm136_vm1, %v1712_v3  ;;  %v1746_v36 = vld [vmem:[#allocation4 + $0x12c] ss:$24 sps:$4 sm:$0xff]   ;;  %v1744_v37 = vld [vmem:[#allocation4 + $0x128] ss:$24 sps:$4 sm:$0xff]   ;;  %v1752_v40 = vld [vmem:[#allocation4 + $0xfc] ss:$24 sps:$4 sm:$0xff]  }
  0x3d   :  { %1173 = vmatpush1.bf16.msra.mxu0 %v1735_v31  ;;  %v1749_v38 = vld [vmem:[#allocation4 + $0xf4] ss:$24 sps:$4 sm:$0xff]   ;;  %v1747_v39 = vld [vmem:[#allocation4 + $0xf0] ss:$24 sps:$4 sm:$0xff]   ;;  %v1755_v42 = vld [vmem:[#allocation4 + $0xc4] ss:$24 sps:$4 sm:$0xff]  }
  0x3e   :  { %1174 = vmatprep.subr.bf16.mxu0 %v1743_v34  ;;  %v1750_v41 = vld [vmem:[#allocation4 + $0xf8] ss:$24 sps:$4 sm:$0xff]   ;;  %v1758_v44 = vld [vmem:[#allocation4 + $0xcc] ss:$24 sps:$4 sm:$0xff]   ;;  %v1756_v45 = vld [vmem:[#allocation4 + $0xc8] ss:$24 sps:$4 sm:$0xff]  }
  0x3f   :  { %1534 = vmatmul.mubr.msk.bf16.vlgmr.msra.gmra.mxu1 %vm136_vm1, %v1712_v3  ;;  %v1753_v43 = vld [vmem:[#allocation4 + $0xc0] ss:$24 sps:$4 sm:$0xff]   ;;  %v1761_v46 = vld [vmem:[#allocation4 + $0x94] ss:$24 sps:$4 sm:$0xff]   ;;  %v1759_v47 = vld [vmem:[#allocation4 + $0x90] ss:$24 sps:$4 sm:$0xff]  }
  0x40   :  { %374 = vmatpush1.bf16.msra.mxu1 %v344_v16  ;;  %393 = vmatprep.mubr.bf16.mxu1 %v2021_v0  ;;  %v1764_v48 = vld [vmem:[#allocation4 + $0x9c] ss:$24 sps:$4 sm:$0xff]   ;;  %v1762_v49 = vld [vmem:[#allocation4 + $0x98] ss:$24 sps:$4 sm:$0xff]   ;;  %v1770_v52 = vld [vmem:[#allocation4 + $0x6c] ss:$24 sps:$4 sm:$0xff]  }
  0x41   :  { %375 = vmatprep.subr.bf16.mxu1 %v1720_v13  ;;  %1175 = vmatpush1.bf16.msra.mxu0 %v1741_v35  ;;  %v1767_v50 = vld [vmem:[#allocation4 + $0x64] ss:$24 sps:$4 sm:$0xff]   ;;  %v1765_v51 = vld [vmem:[#allocation4 + $0x60] ss:$24 sps:$4 sm:$0xff]   ;;  %v1773_v54 = vld [vmem:[#allocation4 + $0x34] ss:$24 sps:$4 sm:$0xff]   ;;  %v492_v35 = vlaneseq }
  0x42   :  { %1176 = vmatprep.subr.bf16.mxu0 %v1749_v38  ;;  %v1768_v53 = vld [vmem:[#allocation4 + $0x68] ss:$24 sps:$4 sm:$0xff]   ;;  %v1776_v56 = vld [vmem:[#allocation4 + $0x3c] ss:$24 sps:$4 sm:$0xff]   ;;  %v1774_v57 = vld [vmem:[#allocation4 + $0x38] ss:$24 sps:$4 sm:$0xff]  }
  0x43   :  { %v1771_v55 = vld [vmem:[#allocation4 + $0x30] ss:$24 sps:$4 sm:$0xff]   ;;  %v1779_v58 = vld [vmem:[#allocation4 + $0x4] ss:$24 sps:$4 sm:$0xff]   ;;  %v1777_v59 = vld [vmem:[#allocation4] ss:$24 sps:$4 sm:$0xff]  }
  0x44   :  { %376 = vmatpush1.bf16.msra.mxu1 %v1718_v17  ;;  %v1782_v60 = vld [vmem:[#allocation4 + $0xc] ss:$24 sps:$4 sm:$0xff]   ;;  %v1780_v61 = vld [vmem:[#allocation4 + $0x8] ss:$24 sps:$4 sm:$0xff]   ;;  %v1786_v1 = vld [vmem:[#allocation4 + $0x2d8] ss:$24 sps:$4 sm:$0xff]  }
  0x45   :  { %1552 = vmatprep.subr.msk.bf16.mxu1 %vm342_vm2, %v1547_v19  ;;  %1177 = vmatpush1.bf16.msra.mxu0 %v1747_v39  ;;  %v1785_v62 = vld [vmem:[#allocation4 + $0x2d4] ss:$24 sps:$4 sm:$0xff]   ;;  %v1783_v63 = vld [vmem:[#allocation4 + $0x2d0] ss:$24 sps:$4 sm:$0xff]   ;;  %v1791_v2 = vld [vmem:[#allocation4 + $0x2a4] ss:$24 sps:$4 sm:$0xff]  }
  0x46   :  { %1178 = vmatprep.subr.bf16.mxu0 %v1755_v42  ;;  %v1789_v3 = vld [vmem:[#allocation4 + $0x2a0] ss:$24 sps:$4 sm:$0xff]   ;;  %v1794_v4 = vld [vmem:[#allocation4 + $0x2ac] ss:$24 sps:$4 sm:$0xff]   ;;  %v1795_v7 = vld [vmem:[#allocation4 + $0x270] ss:$24 sps:$4 sm:$0xff]  }
  0x47   :  { %1551 = vmatmul.mubr.msk.bf16.vlgmr.msra.gmra.mxu1 %vm338_vm3, %v1721_v18  ;;  %v1792_v5 = vld [vmem:[#allocation4 + $0x2a8] ss:$24 sps:$4 sm:$0xff]   ;;  %v1797_v6 = vld [vmem:[#allocation4 + $0x274] ss:$24 sps:$4 sm:$0xff]   ;;  %v1798_v9 = vld [vmem:[#allocation4 + $0x278] ss:$24 sps:$4 sm:$0xff]  }
  0x48   :  { %417 = vmatpush1.bf16.msra.mxu1 %v350_v23  ;;  %436 = vmatprep.mubr.bf16.mxu1 %v2021_v0  ;;  %v1800_v8 = vld [vmem:[#allocation4 + $0x27c] ss:$24 sps:$4 sm:$0xff]   ;;  %v1801_v11 = vld [vmem:[#allocation4 + $0x240] ss:$24 sps:$4 sm:$0xff]   ;;  %v1806_v12 = vld [vmem:[#allocation4 + $0x24c] ss:$24 sps:$4 sm:$0xff]  }
  0x49   :  { %418 = vmatprep.subr.bf16.mxu1 %v1726_v21  ;;  %1179 = vmatpush1.bf16.msra.mxu0 %v1753_v43  ;;  %v1803_v10 = vld [vmem:[#allocation4 + $0x244] ss:$24 sps:$4 sm:$0xff]   ;;  %v1804_v13 = vld [vmem:[#allocation4 + $0x248] ss:$24 sps:$4 sm:$0xff]   ;;  %v1809_v14 = vld [vmem:[#allocation4 + $0x214] ss:$24 sps:$4 sm:$0xff]  }
  0x4a   :  { %1180 = vmatprep.subr.bf16.mxu0 %v1761_v46  ;;  %v1807_v15 = vld [vmem:[#allocation4 + $0x210] ss:$24 sps:$4 sm:$0xff]   ;;  %v1812_v16 = vld [vmem:[#allocation4 + $0x21c] ss:$24 sps:$4 sm:$0xff]   ;;  %v1813_v19 = vld [vmem:[#allocation4 + $0x1e0] ss:$24 sps:$4 sm:$0xff]  }
  0x4b   :  { %v1810_v17 = vld [vmem:[#allocation4 + $0x218] ss:$24 sps:$4 sm:$0xff]   ;;  %v1818_v20 = vld [vmem:[#allocation4 + $0x1ec] ss:$24 sps:$4 sm:$0xff]   ;;  %v1816_v21 = vld [vmem:[#allocation4 + $0x1e8] ss:$24 sps:$4 sm:$0xff]  }
  0x4c   :  { %419 = vmatpush1.bf16.msra.mxu1 %v1724_v24  ;;  %v1819_v22 = vld [vmem:[#allocation4 + $0x1b0] ss:$24 sps:$4 sm:$0xff]   ;;  %v1821_v23 = vld [vmem:[#allocation4 + $0x1b4] ss:$24 sps:$4 sm:$0xff]   ;;  %v1827_v26 = vld [vmem:[#allocation4 + $0x184] ss:$24 sps:$4 sm:$0xff]  }
  0x4d   :  { %1554 = vmatprep.subr.msk.bf16.mxu1 %vm342_vm2, %v1549_v25  ;;  %1181 = vmatpush1.bf16.msra.mxu0 %v1759_v47  ;;  %v1822_v24 = vld [vmem:[#allocation4 + $0x1b8] ss:$24 sps:$4 sm:$0xff]   ;;  %v1824_v25 = vld [vmem:[#allocation4 + $0x1bc] ss:$24 sps:$4 sm:$0xff]   ;;  %v2126_v38 = vshrl.u32 %v492_v35, 7 }
  0x4e   :  { %1182 = vmatprep.subr.bf16.mxu0 %v1767_v50  ;;  %v1833_v30 = vld [vmem:[#allocation4 + $0x164] ss:$24 sps:$4 sm:$0xff]  }
  0x4f   :  { %1553 = vmatmul.mubr.msk.bf16.vlgmr.msra.gmra.mxu1 %vm338_vm3, %v1721_v18  ;;  %v490_v43 = vld [vmem:[%s2176_s4] sm:$0x3f] }
  0x50   :  { %460 = vmatpush1.bf16.msra.mxu1 %v356_v28  ;;  %479 = vmatprep.mubr.bf16.mxu1 %v2021_v0  ;;  %v1788_v0 = vld [vmem:[#allocation4 + $0x2dc] ss:$24 sps:$4 sm:$0xff]   ;;  %v1825_v28 = vld [vmem:[#allocation4 + $0x180] ss:$24 sps:$4 sm:$0xff]  }
  0x51   :  { %461 = vmatprep.subr.bf16.mxu1 %v1734_v27  ;;  %1183 = vmatpush1.bf16.msra.mxu0 %v1765_v51  ;;  %v1830_v27 = vld [vmem:[#allocation4 + $0x18c] ss:$24 sps:$4 sm:$0xff]  }
  0x52   :  { %1184 = vmatprep.subr.bf16.mxu0 %v1773_v54 }
  0x54   :  { %462 = vmatpush1.bf16.msra.mxu1 %v1732_v29  ;;  %v1828_v29 = vld [vmem:[#allocation4 + $0x188] ss:$24 sps:$4 sm:$0xff]  }
  0x55   :  { %1215 = vmatprep.subr.bf16.mxu1 %v1740_v32  ;;  %1185 = vmatpush1.bf16.msra.mxu0 %v1771_v55 }
  0x56   :  { %1186 = vmatprep.subr.bf16.mxu0 %v1779_v58  ;;  %v506_v58 = vsub.s32 3, %v2126_v38 }
  0x57   :  { %1555 = vmatmul.mubr.msk.bf16.vlgmr.msra.gmra.mxu1 %vm338_vm3, %v1721_v18  ;;  %v1815_v18 = vld [vmem:[#allocation4 + $0x1e4] ss:$24 sps:$4 sm:$0xff]  }
  0x58   :  { %1216 = vmatpush1.bf16.msra.mxu1 %v1738_v33 }
  0x59   :  { %1217 = vmatprep.subr.bf16.mxu1 %v1746_v36  ;;  %1187 = vmatpush1.bf16.msra.mxu0 %v1777_v59 }
  0x5a   :  { %1188 = vmatprep.subr.bf16.mxu0 %v1785_v62 }
  0x5c   :  { %1218 = vmatpush1.bf16.msra.mxu1 %v1744_v37 }
  0x5d   :  { %1219 = vmatprep.subr.bf16.mxu1 %v1752_v40  ;;  %1189 = vmatpush2.bf16.msra.mxu0 %v1783_v63 }
  0x5e   :  { %1190 = vmatprep.subr.bf16.mxu0 %v1791_v2 }
  0x60   :  { %1220 = vmatpush1.bf16.msra.mxu1 %v1750_v41  ;;  %v494_v41 = vsub.s32 0, %v2126_v38 }
  0x61   :  { %1221 = vmatprep.subr.bf16.mxu1 %v1758_v44  ;;  %1191 = vmatpush2.bf16.msra.mxu0 %v1789_v3  ;;  %v498_v44 = vsub.s32 1, %v2126_v38 }
  0x62   :  { %1192 = vmatprep.subr.bf16.mxu0 %v1797_v6  ;;  %v495_v47 = vrot.slane %v490_v43, %v494_v41  ;;  %v510_v6 = vsub.s32 4, %v2126_v38 }
  0x63   :  { %v499_v50 = vrot.slane %v490_v43, %v498_v44 }
  0x64   :  { %1222 = vmatpush1.bf16.msra.mxu1 %v1756_v45 }
  0x65   :  { %1223 = vmatprep.subr.bf16.mxu1 %v1764_v48  ;;  %1193 = vmatpush2.bf16.msra.mxu0 %v1795_v7 }
  0x66   :  { %1194 = vmatprep.subr.bf16.mxu0 %v1803_v10 }
  0x68   :  { %1224 = vmatpush1.bf16.msra.mxu1 %v1762_v49 }
  0x69   :  { %1225 = vmatprep.subr.bf16.mxu1 %v1770_v52  ;;  %1195 = vmatpush2.bf16.msra.mxu0 %v1801_v11 }
  0x6a   :  { %1196 = vmatprep.subr.bf16.mxu0 %v1809_v14 }
  0x6c   :  { %1226 = vmatpush1.bf16.msra.mxu1 %v1768_v53 }
  0x6d   :  { %1227 = vmatprep.subr.bf16.mxu1 %v1776_v56  ;;  %1197 = vmatpush2.bf16.msra.mxu0 %v1807_v15  ;;  %v502_v56 = vsub.s32 2, %v2126_v38 }
  0x6e   :  { %1198 = vmatprep.subr.bf16.mxu0 %v1815_v18 }
  0x6f   :  { %v503_v3 = vrot.slane %v490_v43, %v502_v56 }
  0x70   :  { %1228 = vmatpush1.bf16.msra.mxu1 %v1774_v57 }
  0x71   :  { %1229 = vmatprep.subr.bf16.mxu1 %v1782_v60  ;;  %1199 = vmatpush2.bf16.msra.mxu0 %v1813_v19 }
  0x72   :  { %1200 = vmatprep.subr.bf16.mxu0 %v1821_v23 }
  0x74   :  { %1230 = vmatpush1.bf16.msra.mxu1 %v1780_v61 }
  0x75   :  { %1231 = vmatprep.subr.bf16.mxu1 %v1788_v0  ;;  %1201 = vmatpush2.bf16.msra.mxu0 %v1819_v22 }
  0x76   :  { %1202 = vmatprep.subr.bf16.mxu0 %v1827_v26 }
  0x78   :  { %1232 = vmatpush2.bf16.msra.mxu1 %v1786_v1 }
  0x79   :  { %1233 = vmatprep.subr.bf16.mxu1 %v1794_v4  ;;  %1203 = vmatpush2.bf16.msra.mxu0 %v1825_v28  ;;  %v507_v4 = vrot.slane %v490_v43, %v506_v58 }
  0x7a   :  { %1258 = vmatprep.subr.bf16.mxu0 %v1833_v30 }
  0x7c   :  { %1234 = vmatpush2.bf16.msra.mxu1 %v1792_v5 }
  0x7d   :  { %1235 = vmatprep.subr.bf16.mxu1 %v1800_v8 }
  0x80   :  { %1236 = vmatpush2.bf16.msra.mxu1 %v1798_v9 }
  0x81   :  { %1237 = vmatprep.subr.bf16.mxu1 %v1806_v12 }
  0x84   :  { %1238 = vmatpush2.bf16.msra.mxu1 %v1804_v13 }
  0x85   :  { %1239 = vmatprep.subr.bf16.mxu1 %v1812_v16  ;;  %v511_v16 = vrot.slane %v490_v43, %v510_v6 }
  0x88   :  { %1240 = vmatpush2.bf16.msra.mxu1 %v1810_v17  ;;  %v514_v17 = vsub.s32 5, %v2126_v38 }
  0x89   :  { %1241 = vmatprep.subr.bf16.mxu1 %v1818_v20 }
  0x8c   :  { %1242 = vmatpush2.bf16.msra.mxu1 %v1816_v21 }
  0x8d   :  { %1243 = vmatprep.subr.bf16.mxu1 %v1824_v25  ;;  %v515_v25 = vrot.slane %v490_v43, %v514_v17 }
  0x90   :  { %1244 = vmatpush2.bf16.msra.mxu1 %v1822_v24 }
  0x91   :  { %1245 = vmatprep.subr.bf16.mxu1 %v1830_v27 }
  0x94   :  { %1246 = vmatpush2.bf16.msra.mxu1 %v1828_v29 }
  0xf7   :  { %v193_v31 = vpop.f32.mrf.mxu1 }
  0xf9   :  { %v195_v32 = vpop.f32.mrf.mxu1 }
  0xfb   :  { %v197_v33 = vpop.f32.mrf.mxu1 }
  0xfc   :  { %v279_v63 = vpop.f32.mrf.mxu0 }
  0xfd   :  { %v199_v34 = vpop.f32.mrf.mxu1 }
  0xfe   :  { %v281_v11 = vpop.f32.mrf.mxu0 }
  0xff   :  { %v236_v36 = vpop.f32.mrf.mxu1 }
 0x100   :  { %v283_v22 = vpop.f32.mrf.mxu0 }
 0x101   :  { %v238_v37 = vpop.f32.mrf.mxu1 }
 0x102   :  { %v285_v30 = vpop.f32.mrf.mxu0 }
 0x103   :  { %v240_v39 = vpop.f32.mrf.mxu1 }
 0x105   :  { %v242_v40 = vpop.f32.mrf.mxu1 }
 0x107   :  { %v395_v42 = vpop.f32.mrf.mxu1 }
 0x108   :  { %v396_v46 = vadd.f32 %v395_v42, %v193_v31 }
 0x109   :  { %v397_v45 = vpop.f32.mrf.mxu1 }
 0x10a   :  { %v398_v49 = vadd.f32 %v397_v45, %v195_v32  ;;  %v522_v53 = vadd.f32 %v495_v47, %v396_v46 }
 0x10b   :  { %v399_v48 = vpop.f32.mrf.mxu1 }
 0x10c   :  { %v400_v51 = vadd.f32 %v399_v48, %v197_v33  ;;  %v523_v59 = vadd.f32 %v499_v50, %v398_v49 }
 0x10d   :  { %v401_v52 = vpop.f32.mrf.mxu1 }
 0x10e   :  { %v528_v54 = vadd.f32 %v495_v47, %v400_v51  ;;  %v402_v55 = vadd.f32 %v401_v52, %v199_v34 }
 0x10f   :  { %v438_v57 = vpop.f32.mrf.mxu1 }
 0x110   :  { %v534_v60 = vpack.c.bf16 %v528_v54, %v522_v53  ;;  %v529_v61 = vadd.f32 %v499_v50, %v402_v55  ;;  %v439_v2 = vadd.f32 %v438_v57, %v236_v36 }
 0x111   :  { %v440_v62 = vpop.f32.mrf.mxu1 }
 0x112   :  { %v540_v0 = vmul.bf16 1056980736, %v534_v60  ;;  %v535_v1 = vpack.c.bf16 %v529_v61, %v523_v59  ;;  %v441_v8 = vadd.f32 %v440_v62, %v238_v37  ;;  %v524_v12 = vadd.f32 %v503_v3, %v439_v2  ;;  %v1836_v2 = vld [vmem:[#allocation4 + $0x134] ss:$24 sps:$4 sm:$0xff]  }
 0x113   :  { %v442_v5 = vpop.f32.mrf.mxu1 }
 0x114   :  { %1895 = vtanh.bf16 %v540_v0  ;;  %v541_v7 = vmul.bf16 1056980736, %v535_v1  ;;  %v443_v9 = vadd.f32 %v442_v5, %v240_v39  ;;  %v525_v18 = vadd.f32 %v507_v4, %v441_v8  ;;  %v1831_v0 = vld [vmem:[#allocation4 + $0x160] ss:$24 sps:$4 sm:$0xff]   ;;  %v1840_v8 = vld [vmem:[#allocation4 + $0xd0] ss:$24 sps:$4 sm:$0xff]  }
 0x115   :  { %v444_v10 = vpop.f32.mrf.mxu1  ;;  %v1837_v5 = vld [vmem:[#allocation4 + $0x100] ss:$24 sps:$4 sm:$0xff]  }
 0x116   :  { %1897 = vtanh.bf16 %v541_v7  ;;  %v530_v13 = vadd.f32 %v503_v3, %v443_v9  ;;  %v445_v14 = vadd.f32 %v444_v10, %v242_v40  ;;  %v1834_v3 = vld [vmem:[#allocation4 + $0x130] ss:$24 sps:$4 sm:$0xff]   ;;  %v1842_v7 = vld [vmem:[#allocation4 + $0xd4] ss:$24 sps:$4 sm:$0xff]   ;;  %v1845_v9 = vld [vmem:[#allocation4 + $0xa4] ss:$24 sps:$4 sm:$0xff]  }
 0x117   :  { %v481_v15 = vpop.f32.mrf.mxu1  ;;  %v1843_v10 = vld [vmem:[#allocation4 + $0xa0] ss:$24 sps:$4 sm:$0xff]  }
 0x118   :  { %v536_v19 = vpack.c.bf16 %v530_v13, %v524_v12  ;;  %v531_v20 = vadd.f32 %v507_v4, %v445_v14  ;;  %v482_v21 = vadd.f32 %v481_v15, %v279_v63  ;;  %v1839_v4 = vld [vmem:[#allocation4 + $0x104] ss:$24 sps:$4 sm:$0xff]   ;;  %v1846_v12 = vld [vmem:[#allocation4 + $0x70] ss:$24 sps:$4 sm:$0xff]   ;;  %v1849_v14 = vld [vmem:[#allocation4 + $0x40] ss:$24 sps:$4 sm:$0xff]  }
 0x119   :  { %v483_v23 = vpop.f32.mrf.mxu1  ;;  %v1851_v13 = vld [vmem:[#allocation4 + $0x44] ss:$24 sps:$4 sm:$0xff]   ;;  %v1854_v15 = vld [vmem:[#allocation4 + $0x14] ss:$24 sps:$4 sm:$0xff]  }
 0x11a   :  { %1899 = vtanh.bf16 %v536_v19  ;;  %v537_v24 = vpack.c.bf16 %v531_v20, %v525_v18  ;;  %v526_v27 = vadd.f32 %v511_v16, %v482_v21  ;;  %v484_v28 = vadd.f32 %v483_v23, %v281_v11  ;;  %v1848_v11 = vld [vmem:[#allocation4 + $0x74] ss:$24 sps:$4 sm:$0xff]   ;;  %v1857_v18 = vld [vmem:[#allocation4 + $0x2e4] ss:$24 sps:$4 sm:$0xff]   ;;  %v1855_v19 = vld [vmem:[#allocation4 + $0x2e0] ss:$24 sps:$4 sm:$0xff]  }
 0x11b   :  { %v485_v26 = vpop.f32.mrf.mxu1  ;;  %v1860_v20 = vld [vmem:[#allocation4 + $0x2b4] ss:$24 sps:$4 sm:$0xff]   ;;  %v1858_v21 = vld [vmem:[#allocation4 + $0x2b0] ss:$24 sps:$4 sm:$0xff]   ;;  %v1861_v23 = vld [vmem:[#allocation4 + $0x280] ss:$24 sps:$4 sm:$0xff]  }
 0x11c   :  { %1901 = vtanh.bf16 %v537_v24  ;;  %v486_v29 = vadd.f32 %v485_v26, %v283_v22  ;;  %v527_v34 = vadd.f32 %v515_v25, %v484_v28  ;;  %v1863_v22 = vld [vmem:[#allocation4 + $0x284] ss:$24 sps:$4 sm:$0xff]   ;;  %v1866_v24 = vld [vmem:[#allocation4 + $0x254] ss:$24 sps:$4 sm:$0xff]  }
 0x11d   :  { %v487_v31 = vpop.f32.mrf.mxu1  ;;  %v1869_v26 = vld [vmem:[#allocation4 + $0x224] ss:$24 sps:$4 sm:$0xff]   ;;  %v1872_v28 = vld [vmem:[#allocation4 + $0x1f4] ss:$24 sps:$4 sm:$0xff]  }
 0x11e   :  { %v532_v32 = vadd.f32 %v511_v16, %v486_v29  ;;  %v488_v33 = vadd.f32 %v487_v31, %v285_v30  ;;  %v1852_v16 = vld [vmem:[#allocation4 + $0x10] ss:$24 sps:$4 sm:$0xff]   ;;  %v1875_v30 = vld [vmem:[#allocation4 + $0x1c4] ss:$24 sps:$4 sm:$0xff]   ;;  %v1873_v31 = vld [vmem:[#allocation4 + $0x1c0] ss:$24 sps:$4 sm:$0xff]  }
 0x11f   :  { %v1870_v29 = vld [vmem:[#allocation4 + $0x1f0] ss:$24 sps:$4 sm:$0xff]  }
 0x120   :  { %v538_v35 = vpack.c.bf16 %v532_v32, %v526_v27  ;;  %v533_v36 = vadd.f32 %v515_v25, %v488_v33  ;;  %v1864_v25 = vld [vmem:[#allocation4 + $0x250] ss:$24 sps:$4 sm:$0xff]   ;;  %v1867_v27 = vld [vmem:[#allocation4 + $0x220] ss:$24 sps:$4 sm:$0xff]   ;;  %v1878_v32 = vld [vmem:[#allocation4 + $0x194] ss:$24 sps:$4 sm:$0xff]  }
 0x121   :  { %v1876_v33 = vld [vmem:[#allocation4 + $0x190] ss:$24 sps:$4 sm:$0xff]  }
 0x122   :  { %v1896_v37 = vpop.eup %1895  ;;  %v550_v39 = vmul.bf16 1056980736, %v538_v35  ;;  %v539_v40 = vpack.c.bf16 %v533_v36, %v527_v34  ;;  %v1879_v34 = vld [vmem:[#allocation7 + $0x78] sm:$0xff]   ;;  %v1881_v36 = vld [vmem:[#allocation7 + $0x70] sm:$0xff]  }
 0x123   :  { %v544_v42 = vadd.bf16 1065369472, %v1896_v37  ;;  %v1880_v35 = vld [vmem:[#allocation7 + $0x38] sm:$0xff]   ;;  %1678 = vmatprep.subr.bf16.mxu1 %v1879_v34  ;;  %v1882_v37 = vld [vmem:[#allocation7 + $0x30] sm:$0xff]  }
 0x124   :  { %v1898_v45 = vpop.eup %1897  ;;  %v551_v46 = vmul.bf16 1056980736, %v539_v40  ;;  %1903 = vtanh.bf16 %v550_v39  ;;  %v1883_v39 = vld [vmem:[#allocation7 + $0x68] sm:$0xff]  }
 0x125   :  { %v545_v47 = vadd.bf16 1065369472, %v1898_v45  ;;  %v546_v43 = vmul.bf16 1056980736, %v544_v42  ;;  %v1884_v40 = vld [vmem:[#allocation7 + $0x28] sm:$0xff]   ;;  %v1885_v42 = vld [vmem:[#allocation7 + $0x60] sm:$0xff]  }
 0x126   :  { %1905 = vtanh.bf16 %v551_v46  ;;  %v1886_v45 = vld [vmem:[#allocation7 + $0x20] sm:$0xff]   ;;  %v1887_v46 = vld [vmem:[#allocation7 + $0x58] sm:$0xff]  }
 0x127   :  { %v547_v49 = vmul.bf16 1056980736, %v545_v47  ;;  %v1888_v47 = vld [vmem:[#allocation7 + $0x18] sm:$0xff]  }
 0x128   :  { %v1900_v48 = vpop.eup %1899 }
 0x129   :  { %v558_v50 = vmul.bf16 %v1900_v48, %v546_v43  ;;  %v1889_v43 = vld [vmem:[#allocation7 + $0x50] sm:$0xff]  }
 0x12a   :  { %v1902_v51 = vpop.eup %1901  ;;  %v1890_v48 = vld [vmem:[#allocation7 + $0x10] sm:$0xff]  }
 0x12b   :  { %v559_v52 = vmul.bf16 %v1902_v51, %v547_v49  ;;  %1907 = vtanh.bf16 %v558_v50  ;;  %v1891_v49 = vld [vmem:[#allocation7 + $0x48] sm:$0xff]   ;;  %v1893_v51 = vld [vmem:[#allocation7 + $0x40] sm:$0xff]  }
 0x12c   :  { %v1892_v50 = vld [vmem:[#allocation7 + $0x8] sm:$0xff]  }
 0x12d   :  { %1909 = vtanh.bf16 %v559_v52  ;;  %v1894_v52 = vld [vmem:[#allocation7] sm:$0xff]  }
 0x132   :  { %v1904_v53 = vpop.eup %1903 }
 0x133   :  { %v554_v57 = vadd.bf16 1065369472, %v1904_v53 }
 0x134   :  { %v1906_v54 = vpop.eup %1905 }
 0x135   :  { %v555_v55 = vadd.bf16 1065369472, %v1906_v54  ;;  %v556_v62 = vmul.bf16 1056980736, %v554_v57  ;;  %v660_v57 = vld [vmem:[#allocation6] sm:$0x3f] }
 0x137   :  { %v557_v60 = vmul.bf16 1056980736, %v555_v55 }
 0x139   :  { %v1908_v59 = vpop.eup %1907 }
 0x13a   :  { %v2149_v1 = vmul.bf16 %v1908_v59, %v556_v62 }
 0x13b   :  { %v1910_v61 = vpop.eup %1909 }
 0x13c   :  { %v563_v63 = vmul.bf16 %v1910_v61, %v557_v60  ;;  %v669_v60 = vrot.slane %v660_v57, %v498_v44  ;;  %v665_v61 = vrot.slane %v660_v57, %v494_v41  ;;  %v673_v44 = vrot.slane %v660_v57, %v502_v56 }
 0x13e   :  { %1204 = vmatprep.mubr.bf16.mxu0 %v563_v63  ;;  %1247 = vmatprep.mubr.bf16.mxu1 %v563_v63 }
 0x13f   :  { %1205 = vmatmul.mubr.bf16.vlgmr.msra.gmra.mxu0 %v2149_v1  ;;  %1248 = vmatmul.mubr.bf16.vlgmr.msra.gmra.mxu1 %v2149_v1 }
 0x140   :  { %1259 = vmatpush1.bf16.msra.mxu0 %v1831_v0  ;;  %1290 = vmatprep.mubr.bf16.mxu0 %v563_v63 }
 0x141   :  { %1260 = vmatprep.subr.bf16.mxu0 %v1836_v2  ;;  %1679 = vmatpush3.bf16.msra.mxu1 %v1880_v35 }
 0x142   :  { %1680 = vmatprep.subr.bf16.mxu1 %v1881_v36 }
 0x144   :  { %1261 = vmatpush1.bf16.msra.mxu0 %v1834_v3 }
 0x145   :  { %1262 = vmatprep.subr.bf16.mxu0 %v1839_v4  ;;  %1681 = vmatpush3.bf16.msra.mxu1 %v1882_v37 }
 0x146   :  { %1682 = vmatprep.subr.bf16.mxu1 %v1883_v39 }
 0x148   :  { %1263 = vmatpush1.bf16.msra.mxu0 %v1837_v5 }
 0x149   :  { %1264 = vmatprep.subr.bf16.mxu0 %v1842_v7  ;;  %1683 = vmatpush3.bf16.msra.mxu1 %v1884_v40 }
 0x14a   :  { %1684 = vmatprep.subr.bf16.mxu1 %v1885_v42 }
 0x14c   :  { %1265 = vmatpush1.bf16.msra.mxu0 %v1840_v8 }
 0x14d   :  { %1266 = vmatprep.subr.bf16.mxu0 %v1845_v9  ;;  %1685 = vmatpush3.bf16.msra.mxu1 %v1886_v45 }
 0x14e   :  { %1686 = vmatprep.subr.bf16.mxu1 %v1887_v46 }
 0x150   :  { %1267 = vmatpush1.bf16.msra.mxu0 %v1843_v10 }
 0x151   :  { %1268 = vmatprep.subr.bf16.mxu0 %v1848_v11  ;;  %1687 = vmatpush3.bf16.msra.mxu1 %v1888_v47  ;;  %v677_v11 = vrot.slane %v660_v57, %v506_v58 }
 0x152   :  { %1688 = vmatprep.subr.bf16.mxu1 %v1889_v43 }
 0x154   :  { %1269 = vmatpush1.bf16.msra.mxu0 %v1846_v12 }
 0x155   :  { %1270 = vmatprep.subr.bf16.mxu0 %v1851_v13  ;;  %1689 = vmatpush3.bf16.msra.mxu1 %v1890_v48 }
 0x156   :  { %1690 = vmatprep.subr.bf16.mxu1 %v1891_v49 }
 0x158   :  { %1271 = vmatpush1.bf16.msra.mxu0 %v1849_v14 }
 0x159   :  { %1272 = vmatprep.subr.bf16.mxu0 %v1854_v15  ;;  %1691 = vmatpush3.bf16.msra.mxu1 %v1892_v50 }
 0x15a   :  { %1692 = vmatprep.subr.bf16.mxu1 %v1893_v51 }
 0x15c   :  { %1273 = vmatpush1.bf16.msra.mxu0 %v1852_v16 }
 0x15d   :  { %1274 = vmatprep.subr.bf16.mxu0 %v1857_v18  ;;  %1693 = vmatpush3.bf16.msra.mxu1 %v1894_v52 }
 0x160   :  { %1275 = vmatpush2.bf16.msra.mxu0 %v1855_v19  ;;  %v681_v19 = vrot.slane %v660_v57, %v510_v6 }
 0x161   :  { %1276 = vmatprep.subr.bf16.mxu0 %v1860_v20 }
 0x164   :  { %1277 = vmatpush2.bf16.msra.mxu0 %v1858_v21 }
 0x165   :  { %1278 = vmatprep.subr.bf16.mxu0 %v1863_v22  ;;  %v685_v22 = vrot.slane %v660_v57, %v514_v17 }
 0x168   :  { %1279 = vmatpush2.bf16.msra.mxu0 %v1861_v23 }
 0x169   :  { %1280 = vmatprep.subr.bf16.mxu0 %v1866_v24 }
 0x16c   :  { %1281 = vmatpush2.bf16.msra.mxu0 %v1864_v25 }
 0x16d   :  { %1282 = vmatprep.subr.bf16.mxu0 %v1869_v26 }
 0x170   :  { %1283 = vmatpush2.bf16.msra.mxu0 %v1867_v27 }
 0x171   :  { %1284 = vmatprep.subr.bf16.mxu0 %v1872_v28 }
 0x174   :  { %1285 = vmatpush2.bf16.msra.mxu0 %v1870_v29 }
 0x175   :  { %1286 = vmatprep.subr.bf16.mxu0 %v1875_v30 }
 0x178   :  { %1287 = vmatpush2.bf16.msra.mxu0 %v1873_v31 }
 0x179   :  { %1288 = vmatprep.subr.bf16.mxu0 %v1878_v32 }
 0x17c   :  { %1289 = vmatpush2.bf16.msra.mxu0 %v1876_v33 }
 0x17f   :  { %1291 = vmatmul.mubr.bf16.vlgmr.msra.gmra.mxu0 %v2149_v1 }
 0x1ff   :  { %v1206_v53 = vpop.f32.mrf.mxu0  ;;  %v1249_v62 = vpop.f32.mrf.mxu1 }
 0x200   :  { %v1207_v2 = vadd.f32 %v1206_v53, %v665_v61  ;;  %v1250_v14 = vadd.f32 %v1249_v62, %v673_v44 }
 0x201   :  { %v1208_v54 = vpop.f32.mrf.mxu0  ;;  %v1251_v3 = vpop.f32.mrf.mxu1 }
 0x202   :  { %v1209_v1 = vadd.f32 %v1208_v54, %v669_v60  ;;  %v1252_v13 = vadd.f32 %v1251_v3, %v677_v11  ;;  %v1652_v54 = vld [vmem:[%s2180_s8] ss:$0 sm:$0xff] }
 0x203   :  { %v1210_v55 = vpop.f32.mrf.mxu0  ;;  %v1253_v7 = vpop.f32.mrf.mxu1 }
 0x204   :  { %v1211_v0 = vadd.f32 %v1210_v55, %v665_v61  ;;  %v1254_v12 = vadd.f32 %v1253_v7, %v673_v44 }
 0x205   :  { %v1212_v59 = vpop.f32.mrf.mxu0  ;;  %v1255_v10 = vpop.f32.mrf.mxu1 }
 0x206   :  { %v1213_v63 = vadd.f32 %v1212_v59, %v669_v60  ;;  %v1301_v5 = vpack.c.bf16 %v1211_v0, %v1207_v2  ;;  %v1256_v41 = vadd.f32 %v1255_v10, %v677_v11  ;;  %v1303_v16 = vpack.c.bf16 %v1254_v12, %v1250_v14 }
 0x208   :  { %v1302_v4 = vpack.c.bf16 %v1213_v63, %v1209_v1  ;;  %v1307_v9 = vmul.bf16 1056980736, %v1301_v5  ;;  %v1304_v15 = vpack.c.bf16 %v1256_v41, %v1252_v13 }
 0x20a   :  { %v1308_v8 = vmul.bf16 1056980736, %v1302_v4 }
 0x20c   :  { %1911 = vtanh.bf16 %v1308_v8 }
 0x20d   :  { %1913 = vtanh.bf16 %v1307_v9 }
 0x20e   :  { %1915 = vtanh.bf16 %v1304_v15 }
 0x20f   :  { %1917 = vtanh.bf16 %v1303_v16 }
 0x21a   :  { %v1912_v20 = vpop.eup %1911 }
 0x21b   :  { %v1914_v58 = vpop.eup %1913  ;;  %v1312_v23 = vadd.bf16 1065369472, %v1912_v20 }
 0x21c   :  { %v1311_v26 = vadd.bf16 1065369472, %v1914_v58  ;;  %v1916_v35 = vpop.eup %1915 }
 0x21d   :  { %v1314_v31 = vmul.bf16 1056980736, %v1312_v23  ;;  %v1918_v36 = vpop.eup %1917 }
 0x21e   :  { %v1313_v34 = vmul.bf16 1056980736, %v1311_v26 }
 0x21f   :  { %v1326_v37 = vmul.bf16 %v1916_v35, %v1314_v31 }
 0x220   :  { %v1325_v38 = vmul.bf16 %v1918_v36, %v1313_v34 }
 0x23f   :  { %v1292_v18 = vpop.f32.mrf.mxu0 }
 0x240   :  { %v1293_v24 = vadd.f32 %v1292_v18, %v681_v19 }
 0x241   :  { %v1294_v21 = vpop.f32.mrf.mxu0 }
 0x242   :  { %v1295_v28 = vadd.f32 %v1294_v21, %v685_v22 }
 0x243   :  { %v1296_v56 = vpop.f32.mrf.mxu0 }
 0x244   :  { %v1297_v25 = vadd.f32 %v1296_v56, %v681_v19 }
 0x245   :  { %v1298_v27 = vpop.f32.mrf.mxu0 }
 0x246   :  { %v1305_v29 = vpack.c.bf16 %v1297_v25, %v1293_v24  ;;  %v1299_v30 = vadd.f32 %v1298_v27, %v685_v22 }
 0x248   :  { %v1317_v32 = vmul.bf16 1056980736, %v1305_v29  ;;  %v1306_v33 = vpack.c.bf16 %v1299_v30, %v1295_v28 }
 0x24a   :  { %1919 = vtanh.bf16 %v1317_v32  ;;  %v1318_v6 = vmul.bf16 1056980736, %v1306_v33 }
 0x24c   :  { %1921 = vtanh.bf16 %v1318_v6 }
 0x24d   :  { %1923 = vtanh.bf16 %v1326_v37 }
 0x24e   :  { %1925 = vtanh.bf16 %v1325_v38 }
 0x258   :  { %v1920_v17 = vpop.eup %1919 }
 0x259   :  { %v1321_v39 = vadd.bf16 1065369472, %v1920_v17 }
 0x25a   :  { %v1922_v40 = vpop.eup %1921 }
 0x25b   :  { %v1322_v42 = vadd.bf16 1065369472, %v1922_v40  ;;  %v1323_v45 = vmul.bf16 1056980736, %v1321_v39  ;;  %v1924_v47 = vpop.eup %1923 }
 0x25c   :  { %v1926_v43 = vpop.eup %1925 }
 0x25d   :  { %v1324_v46 = vmul.bf16 1056980736, %v1322_v42  ;;  %v1329_v49 = vmul.bf16 %v1926_v43, %v1323_v45 }
 0x25f   :  { %v1330_v48 = vmul.bf16 %v1924_v47, %v1324_v46 }
 0x261   :  { %1498 = vmatprep.mubr.bf16.mxu1 %v1330_v48 }
 0x262   :  { %1499 = vmatmul.mubr.bf16.vlgmr.msra.gmra.mxu1 %v1329_v49 }
 0x322   :  { %v1694_v50 = vpop.f32.mrf.mxu1 }
 0x324   :  { %v1695_v51 = vpop.f32.mrf.mxu1 }
 0x325   :  { %v1696_v53 = vadd.f32 %v1695_v51, %v1694_v50 }
 0x326   :  { %v1697_v52 = vpop.f32.mrf.mxu1 }
 0x327   :  { %v1501_v59 = vadd.f32 %v1696_v53, %v1652_v54 }
 0x328   :  { %v1698_v55 = vpop.f32.mrf.mxu1 }
 0x329   :  { %v1699_v57 = vadd.f32 %v1698_v55, %v1697_v52 }
 0x32b   :  { %v1504_v60 = vadd.f32 %v1699_v57, %v1652_v54 }
 0x32d   :  { %v1676_v61 = vpack.c.bf16 %v1504_v60, %v1501_v59 }
 0x32f   :  { %1677 = vst [vmem:[%s2181_s9] sm:$0xff] %v1676_v61  }
 0x330   :  { %1521 = vsyncpa [#allocation3], 1 }
 0x331   :  { %1522 = vsyncpa [#allocation5], 1 }
 0x332   :  { %1523 = vsyncpa [#allocation8], 1 }

</bundles_post_ra>
